<compile_context>
chip_gen: v7x
topology: tpu7x:2x2x1
jax: 0.10.0
libtpu: 0.0.40
codegen_flags: <defaults>
</compile_context>

<pallas_src>
import functools

import jax
import jax.numpy as jnp
from jax.experimental import pallas as pl
from jax.experimental.pallas import tpu as pltpu

LANE = 128     # TPU vreg lane width
SUBLANE = 8    # f32 sublane width


def _round_up(x, m):
    return ((x + m - 1) // m) * m


def mlp_kernel(x_ref, w1_ref, b1_ref, w2_ref, b2_ref, w3_ref, b3_ref, o_ref):
    # Layer 1: Linear + ReLU.  Bias add / ReLU kept in f32 (v5e VPU has no bf16).
    h = jnp.dot(x_ref[...], w1_ref[...], preferred_element_type=jnp.float32)
    h = jnp.maximum(h + b1_ref[...], 0.0)
    # Layer 2: Linear + ReLU.
    h = jnp.dot(h.astype(w2_ref.dtype), w2_ref[...],
                preferred_element_type=jnp.float32)
    h = jnp.maximum(h + b2_ref[...], 0.0)
    # Output layer: Linear, no activation.  d_out is tiny -> masked store, cheap.
    o = jnp.dot(h.astype(w3_ref.dtype), w3_ref[...],
                preferred_element_type=jnp.float32)
    o_ref[...] = (o + b3_ref[...]).astype(o_ref.dtype)


def _pad2d(a, rows, cols):
    return jnp.pad(a, ((0, rows - a.shape[0]), (0, cols - a.shape[1])))


def _batch_dim_semantics(num_tiles):
    """Use CORE_PARALLEL on v7x (2 TCs) when there are tiles to share."""
    try:
        kind = jax.devices()[0].device_kind.lower()
    except Exception:  # pragma: no cover - defensive
        kind = ""
    if "v7" in kind and num_tiles >= 2 and hasattr(pltpu, "CORE_PARALLEL"):
        return (pltpu.CORE_PARALLEL,)
    return ("parallel",)


@functools.partial(jax.jit, static_argnames=("tile_batch", "use_bf16"))
def perceptron_forward(x, params, *, tile_batch=2048, use_bf16=False):
    """x: (B, d_in) float32; params: (w1, b1, w2, b2, w3, b3) with (in, out) weights.

    Returns (B, d_out) float32.
    """
    w1, b1, w2, b2, w3, b3 = params
    B, d_in = x.shape
    h1, h2, d_out = w1.shape[1], w2.shape[1], w3.shape[1]

    # Only hidden dims are lane-padded (weights are tiny; padding is exact).
    h1_p = _round_up(h1, LANE)
    h2_p = _round_up(h2, LANE)

    mm_dtype = jnp.bfloat16 if use_bf16 else x.dtype
    x_k = x.astype(mm_dtype)
    w1_p = _pad2d(w1, d_in, h1_p).astype(mm_dtype)   # rows at true width d_in
    b1_p = _pad2d(b1, 1, h1_p)                        # biases stay f32
    w2_p = _pad2d(w2, h1_p, h2_p).astype(mm_dtype)
    b2_p = _pad2d(b2, 1, h2_p)
    w3_p = _pad2d(w3, h2_p, d_out).astype(mm_dtype)   # cols at true width d_out
    b3_p = b3                                         # (1, d_out), f32

    # Batch tile: one full-dim block if the whole batch fits (always legal),
    # otherwise fixed 16-aligned tiles (works for f32 and bf16 sublane packing)
    # with a masked partial last block — safe: no cross-row reduction.
    if B <= tile_batch:
        tb = B
    else:
        tb = _round_up(tile_batch, 16)
    num_tiles = pl.cdiv(B, tb)
    grid = (num_tiles,)

    const = lambda i: (0, 0)       # weights/biases: VMEM-resident, never re-fetched
    batch_map = lambda i: (i, 0)   # x / out: tiled along the batch axis

    elt = 2 if use_bf16 else 4
    flops = 2 * B * (d_in * h1_p + h1_p * h2_p + h2_p * d_out)
    bytes_accessed = (
        elt * (B * d_in + d_in * h1_p + h1_p * h2_p + h2_p * d_out)
        + 4 * (B * d_out + h1_p + h2_p + d_out)
    )

    out = pl.pallas_call(
        mlp_kernel,
        out_shape=jax.ShapeDtypeStruct((B, d_out), jnp.float32),
        grid=grid,
        in_specs=[
            # x streamed at its true width; Mosaic pads lanes internally in VMEM.
            # (If a v5e trace shows exposed x DMA at small tb, add
            #  pipeline_mode=pl.Buffered(3) here or grow tile_batch.)
            pl.BlockSpec((tb, d_in), batch_map),
            pl.BlockSpec((d_in, h1_p), const),
            pl.BlockSpec((1, h1_p), const),
            pl.BlockSpec((h1_p, h2_p), const),
            pl.BlockSpec((1, h2_p), const),
            pl.BlockSpec((h2_p, d_out), const),
            pl.BlockSpec((1, d_out), const),
        ],
        out_specs=pl.BlockSpec((tb, d_out), batch_map),
        compiler_params=pltpu.CompilerParams(
            dimension_semantics=_batch_dim_semantics(num_tiles),
        ),
        cost_estimate=pl.CostEstimate(
            flops=flops, transcendentals=0, bytes_accessed=bytes_accessed
        ),
    )(x_k, w1_p, b1_p, w2_p, b2_p, w3_p, b3_p)

    return out


def init_params(key, input_dim, hidden_layers, output_dim):
    """Deterministic PyTorch-Linear-style init: U(-1/sqrt(fan_in), 1/sqrt(fan_in))."""
    dims = [input_dim] + list(hidden_layers) + [output_dim]
    params = []
    for i in range(len(dims) - 1):
        fan_in, fan_out = dims[i], dims[i + 1]
        key, kw, kb = jax.random.split(key, 3)
        bound = 1.0 / float(fan_in) ** 0.5
        # stored as (in, out) so the kernel computes x @ W
        w = jax.random.uniform(kw, (fan_in, fan_out), jnp.float32, -bound, bound)
        b = jax.random.uniform(kb, (1, fan_out), jnp.float32, -bound, bound)
        params.extend([w, b])
    return tuple(params)


def reference_forward(x, params):
    w1, b1, w2, b2, w3, b3 = params
    h = jnp.maximum(x @ w1 + b1, 0.0)
    h = jnp.maximum(h @ w2 + b2, 0.0)
    return h @ w3 + b3


# TODO(synk): training loop / BCE loss / plotting helpers of the PyTorch class are
# host-side utilities, not part of the forward pass, and are not implemented here.

if __name__ == "__main__":
    input_dim = 32
    hidden_layers = [64, 32]
    output_dim = 1
    batch = 8

    key = jax.random.PRNGKey(0)
    key, kx = jax.random.split(key)
    x = jax.random.normal(kx, (batch, input_dim), jnp.float32)
    params = init_params(key, input_dim, hidden_layers, output_dim)

    out = jax.block_until_ready(perceptron_forward(x, params))
    ref = reference_forward(x, params)
    assert out.shape == (batch, output_dim), out.shape
    assert jnp.allclose(out, ref, atol=1e-5, rtol=1e-5), "mismatch vs reference (f32)"

    # Multi-tile batch (partial last block) exercised with a smaller tile.
    key, kx2 = jax.random.split(key)
    x2 = jax.random.normal(kx2, (1000, input_dim), jnp.float32)
    out2 = jax.block_until_ready(perceptron_forward(x2, params, tile_batch=256))
    ref2 = reference_forward(x2, params)
    assert out2.shape == (1000, output_dim), out2.shape
    assert jnp.allclose(out2, ref2, atol=1e-5, rtol=1e-5), "mismatch (tiled batch)"

    # Optional bf16-matmul fast path (f32 accumulation) — looser tolerance.
    out_bf16 = jax.block_until_ready(perceptron_forward(x2, params, use_bf16=True))
    assert out_bf16.shape == (1000, output_dim), out_bf16.shape
    assert jnp.allclose(out_bf16, ref2, atol=5e-2, rtol=5e-2), "mismatch (bf16 path)"

    print("KERNEL_OK")
</pallas_src>

<mosaic_0001>
module attributes {stable_mosaic.version = 11 : i64} {
  func.func @mlp_kernel(%arg0: i32, %arg1: memref<8x32xf32, #tpu.memory_space<vmem>>, %arg2: memref<32x128xf32, #tpu.memory_space<vmem>>, %arg3: memref<1x128xf32, #tpu.memory_space<vmem>>, %arg4: memref<128x128xf32, #tpu.memory_space<vmem>>, %arg5: memref<1x128xf32, #tpu.memory_space<vmem>>, %arg6: memref<128x1xf32, #tpu.memory_space<vmem>>, %arg7: memref<1x1xf32, #tpu.memory_space<vmem>>, %arg8: memref<8x1xf32, #tpu.memory_space<vmem>>) attributes {dimension_semantics = [#tpu.dimension_semantics<parallel>], iteration_bounds = array<i64: 1>, scalar_prefetch = 0 : i64, scratch_operands = 0 : i64, tpu.core_type = #tpu.core_type<tc>, window_params = [{transform_indices = @transform_0, window_bounds = array<i64: 8, 32>}, {pipeline_mode = #tpu.pipeline_mode<synchronous>, transform_indices = @transform_1, window_bounds = array<i64: 32, 128>}, {pipeline_mode = #tpu.pipeline_mode<synchronous>, transform_indices = @transform_2, window_bounds = array<i64: 1, 128>}, {pipeline_mode = #tpu.pipeline_mode<synchronous>, transform_indices = @transform_3, window_bounds = array<i64: 128, 128>}, {pipeline_mode = #tpu.pipeline_mode<synchronous>, transform_indices = @transform_4, window_bounds = array<i64: 1, 128>}, {pipeline_mode = #tpu.pipeline_mode<synchronous>, transform_indices = @transform_5, window_bounds = array<i64: 128, 1>}, {pipeline_mode = #tpu.pipeline_mode<synchronous>, transform_indices = @transform_6, window_bounds = array<i64: 1, 1>}, {transform_indices = @transform_7, window_bounds = array<i64: 8, 1>}]} {
    %c0 = arith.constant 0 : index
    %c0_0 = arith.constant 0 : index
    %0 = vector.load %arg1[%c0, %c0_0] : memref<8x32xf32, #tpu.memory_space<vmem>>, vector<8x32xf32>
    %c0_1 = arith.constant 0 : index
    %c0_2 = arith.constant 0 : index
    %1 = vector.load %arg2[%c0_1, %c0_2] : memref<32x128xf32, #tpu.memory_space<vmem>>, vector<32x128xf32>
    %cst = arith.constant dense<0.000000e+00> : vector<8x128xf32>
    %2 = tpu.matmul %0, %1, %cst {dimension_numbers = #tpu.dot_dimension_numbers<[1], [0], [0], [1], [0, 0, 1, 1], [], []>} : vector<8x32xf32>, vector<32x128xf32>, vector<8x128xf32> -> vector<8x128xf32>
    %c0_3 = arith.constant 0 : index
    %c0_4 = arith.constant 0 : index
    %3 = vector.load %arg3[%c0_3, %c0_4] : memref<1x128xf32, #tpu.memory_space<vmem>>, vector<1x128xf32>
    %4 = vector.broadcast %3 : vector<1x128xf32> to vector<8x128xf32>
    %5 = arith.addf %2, %4 : vector<8x128xf32>
    %cst_5 = arith.constant 0.000000e+00 : f32
    %6 = vector.broadcast %cst_5 : f32 to vector<8x128xf32>
    %7 = arith.maximumf %5, %6 : vector<8x128xf32>
    %c0_6 = arith.constant 0 : index
    %c0_7 = arith.constant 0 : index
    %8 = vector.load %arg4[%c0_6, %c0_7] : memref<128x128xf32, #tpu.memory_space<vmem>>, vector<128x128xf32>
    %cst_8 = arith.constant dense<0.000000e+00> : vector<8x128xf32>
    %9 = tpu.matmul %7, %8, %cst_8 {dimension_numbers = #tpu.dot_dimension_numbers<[1], [0], [0], [1], [0, 0, 1, 1], [], []>} : vector<8x128xf32>, vector<128x128xf32>, vector<8x128xf32> -> vector<8x128xf32>
    %c0_9 = arith.constant 0 : index
    %c0_10 = arith.constant 0 : index
    %10 = vector.load %arg5[%c0_9, %c0_10] : memref<1x128xf32, #tpu.memory_space<vmem>>, vector<1x128xf32>
    %11 = vector.broadcast %10 : vector<1x128xf32> to vector<8x128xf32>
    %12 = arith.addf %9, %11 : vector<8x128xf32>
    %cst_11 = arith.constant 0.000000e+00 : f32
    %13 = vector.broadcast %cst_11 : f32 to vector<8x128xf32>
    %14 = arith.maximumf %12, %13 : vector<8x128xf32>
    %c0_12 = arith.constant 0 : index
    %c0_13 = arith.constant 0 : index
    %15 = vector.load %arg6[%c0_12, %c0_13] : memref<128x1xf32, #tpu.memory_space<vmem>>, vector<128x1xf32>
    %cst_14 = arith.constant dense<0.000000e+00> : vector<8x1xf32>
    %16 = tpu.matmul %14, %15, %cst_14 {dimension_numbers = #tpu.dot_dimension_numbers<[1], [0], [0], [1], [0, 0, 1, 1], [], []>} : vector<8x128xf32>, vector<128x1xf32>, vector<8x1xf32> -> vector<8x1xf32>
    %c0_15 = arith.constant 0 : index
    %c0_16 = arith.constant 0 : index
    %17 = vector.load %arg7[%c0_15, %c0_16] : memref<1x1xf32, #tpu.memory_space<vmem>>, vector<1x1xf32>
    %18 = vector.broadcast %17 : vector<1x1xf32> to vector<8x1xf32>
    %19 = arith.addf %16, %18 : vector<8x1xf32>
    %c0_17 = arith.constant 0 : index
    %c0_18 = arith.constant 0 : index
    %20 = vector.load %arg8[%c0_17, %c0_18] : memref<8x1xf32, #tpu.memory_space<vmem>>, vector<8x1xf32>
    tpu.vector_store %arg8[%c0_17, %c0_18], %19 {strides = array<i32>} : memref<8x1xf32, #tpu.memory_space<vmem>>, vector<8x1xf32>,
    return
  }
  func.func @transform_0(%arg0: i32) -> (i32, i32) {
    %c0_i32 = arith.constant 0 : i32
    %c0_i32_0 = arith.constant 0 : i32
    return %arg0, %c0_i32 : i32, i32
  }
  func.func @transform_1(%arg0: i32) -> (i32, i32) {
    %c0_i32 = arith.constant 0 : i32
    %c0_i32_0 = arith.constant 0 : i32
    %c0_i32_1 = arith.constant 0 : i32
    return %c0_i32, %c0_i32_0 : i32, i32
  }
  func.func @transform_2(%arg0: i32) -> (i32, i32) {
    %c0_i32 = arith.constant 0 : i32
    %c0_i32_0 = arith.constant 0 : i32
    %c0_i32_1 = arith.constant 0 : i32
    return %c0_i32, %c0_i32_0 : i32, i32
  }
  func.func @transform_3(%arg0: i32) -> (i32, i32) {
    %c0_i32 = arith.constant 0 : i32
    %c0_i32_0 = arith.constant 0 : i32
    %c0_i32_1 = arith.constant 0 : i32
    return %c0_i32, %c0_i32_0 : i32, i32
  }
  func.func @transform_4(%arg0: i32) -> (i32, i32) {
    %c0_i32 = arith.constant 0 : i32
    %c0_i32_0 = arith.constant 0 : i32
    %c0_i32_1 = arith.constant 0 : i32
    return %c0_i32, %c0_i32_0 : i32, i32
  }
  func.func @transform_5(%arg0: i32) -> (i32, i32) {
    %c0_i32 = arith.constant 0 : i32
    %c0_i32_0 = arith.constant 0 : i32
    %c0_i32_1 = arith.constant 0 : i32
    return %c0_i32, %c0_i32_0 : i32, i32
  }
  func.func @transform_6(%arg0: i32) -> (i32, i32) {
    %c0_i32 = arith.constant 0 : i32
    %c0_i32_0 = arith.constant 0 : i32
    %c0_i32_1 = arith.constant 0 : i32
    return %c0_i32, %c0_i32_0 : i32, i32
  }
  func.func @transform_7(%arg0: i32) -> (i32, i32) {
    %c0_i32 = arith.constant 0 : i32
    %c0_i32_0 = arith.constant 0 : i32
    return %arg0, %c0_i32 : i32, i32
  }
}

</mosaic_0001>

<bundles_post_ra>
// kernel: perceptron_forward.1
= control target key start
LH: loop header
LB: loop body
LE: loop exit
PB: predicated region body
PF: predicated region fallthrough
CT: control target
= control target key end

     0   :  { %v489_v0 = vmov 0.0|0.0   ;;  %vm490_vm0 = vmmov 0   ;;  %v491_v4 = vmov 0.0   ;;  %vm40_vm1 = vcmask 261120   ;;  %s676_s1 = inlined_call_operand.vmem [shape: f32[32,128], index: 1, kind: input, shape index: {}]   ;;  %s677_s3 = inlined_call_operand.vmem [shape: f32[128,128], index: 3, kind: input, shape index: {}]   ;;  %s678_s0 = inlined_call_operand.vmem [shape: f32[8,32], index: 0, kind: input, shape index: {}]   ;;  %s679_s5 = inlined_call_operand.vmem [shape: f32[128,1], index: 5, kind: input, shape index: {}]   ;;  %s680_s2 = inlined_call_operand.vmem [shape: f32[1,128], index: 2, kind: input, shape index: {}]   ;;  %s681_s6 = inlined_call_operand.<no memory space> [shape: f32[1,1], index: 6, kind: input, shape index: {}]   ;;  %s682_s4 = inlined_call_operand.vmem [shape: f32[1,128], index: 4, kind: input, shape index: {}]   ;;  %s683_s7 = inlined_call_operand.vmem [shape: f32[8,1], index: 7, kind: output, shape index: {}]  }
   0x1   :  { %432 = vmatprep.subr.bf16.mxu0 %v489_v0  ;;  %v29_v1 = vld [vmem:[%s676_s1] sm:$0xff]  ;;  %v30_v2 = vld [vmem:[%s676_s1 + $0x8] sm:$0xff]  ;;  %v31_v3 = vld [vmem:[%s676_s1 + $0x10] sm:$0xff]  ;;  %359 = vmatprep.mubr.msk.f32.mxu0 %vm490_vm0, %v491_v4  ;;  %v12_v62 = vstv %s681_s6  ;;  %vm302_vm2 = vcmask 7168  }
   0x2   :  { %v433_v5 = vpack.c.bf16 %v30_v2, %v29_v1  ;;  %v32_v6 = vld [vmem:[%s676_s1 + $0x18] sm:$0xff]  ;;  %438 = vmatprep.subr.bf16.mxu1 %v489_v0  ;;  %v115_v7 = vld [vmem:[%s677_s3] sm:$0xff]  ;;  %394 = vmatprep.mubr.msk.f32.mxu1 %vm490_vm0, %v491_v4  ;;  %v116_v8 = vld [vmem:[%s677_s3 + $0x8] sm:$0xff]  ;;  %13 = vst [vmem:[#allocation2] sm:$0x1] %v12_v62 }
   0x3   :  { %v117_v9 = vld [vmem:[%s677_s3 + $0x10] sm:$0xff]  ;;  %v118_v10 = vld [vmem:[%s677_s3 + $0x18] sm:$0xff]  ;;  %v436_v11 = vpack.c.bf16 %v32_v6, %v31_v3  ;;  %v439_v12 = vpack.c.bf16 %v116_v8, %v115_v7  ;;  %v119_v14 = vld [vmem:[%s677_s3 + $0x20] sm:$0xff] }
   0x4   :  { %434 = vmatpush3.bf16.msra.mxu0 %v433_v5  ;;  %v442_v13 = vpack.c.bf16 %v118_v10, %v117_v9  ;;  %v120_v15 = vld [vmem:[%s677_s3 + $0x28] sm:$0xff]  ;;  %v28_v16 = vld [vmem:[%s678_s0] sm:$0xff]  ;;  %v121_v18 = vld [vmem:[%s677_s3 + $0x30] sm:$0xff] }
   0x5   :  { %435 = vmatprep.subr.bf16.mxu0 %v489_v0  ;;  %440 = vmatpush3.bf16.msra.mxu1 %v439_v12  ;;  %v445_v17 = vpack.c.bf16 %v120_v15, %v119_v14  ;;  %v122_v19 = vld [vmem:[%s677_s3 + $0x38] sm:$0xff]  ;;  %v123_v21 = vld [vmem:[%s677_s3 + $0x40] sm:$0xff]  ;;  %v124_v22 = vld [vmem:[%s677_s3 + $0x48] sm:$0xff] }
   0x6   :  { %441 = vmatprep.subr.bf16.mxu1 %v489_v0  ;;  %v448_v20 = vpack.c.bf16 %v122_v19, %v121_v18  ;;  %v451_v23 = vpack.c.bf16 %v124_v22, %v123_v21  ;;  %v125_v24 = vld [vmem:[%s677_s3 + $0x50] sm:$0xff]  ;;  %v126_v25 = vld [vmem:[%s677_s3 + $0x58] sm:$0xff]  ;;  %v127_v27 = vld [vmem:[%s677_s3 + $0x60] sm:$0xff] }
   0x7   :  { %v454_v26 = vpack.c.bf16 %v126_v25, %v125_v24  ;;  %v128_v28 = vld [vmem:[%s677_s3 + $0x68] sm:$0xff]  ;;  %v129_v30 = vld [vmem:[%s677_s3 + $0x70] sm:$0xff]  ;;  %v130_v31 = vld [vmem:[%s677_s3 + $0x78] sm:$0xff] }
   0x8   :  { %437 = vmatpush3.bf16.msra.mxu0 %v436_v11  ;;  %v457_v29 = vpack.c.bf16 %v128_v28, %v127_v27  ;;  %v460_v32 = vpack.c.bf16 %v130_v31, %v129_v30  ;;  %v209_v33 = vld [vmem:[%s679_s5] sm:$0xff]  ;;  %v210_v34 = vld [vmem:[%s679_s5 + $0x8] sm:$0xff]  ;;  %v211_v35 = vld [vmem:[%s679_s5 + $0x10] sm:$0xff] }
   0x9   :  { %462 = vmatprep.subr.bf16.mxu0 %v489_v0  ;;  %443 = vmatpush3.bf16.msra.mxu1 %v442_v13  ;;  %v463_v36 = vpack.c.bf16 %v210_v34, %v209_v33  ;;  %v212_v37 = vld [vmem:[%s679_s5 + $0x18] sm:$0xff]  ;;  %v213_v39 = vld [vmem:[%s679_s5 + $0x20] sm:$0xff]  ;;  %v214_v40 = vld [vmem:[%s679_s5 + $0x28] sm:$0xff] }
   0xa   :  { %444 = vmatprep.subr.bf16.mxu1 %v489_v0  ;;  %v466_v38 = vpack.c.bf16 %v212_v37, %v211_v35  ;;  %v469_v41 = vpack.c.bf16 %v214_v40, %v213_v39  ;;  %v215_v42 = vld [vmem:[%s679_s5 + $0x30] sm:$0xff]  ;;  %v216_v43 = vld [vmem:[%s679_s5 + $0x38] sm:$0xff]  ;;  %v217_v45 = vld [vmem:[%s679_s5 + $0x40] sm:$0xff] }
   0xb   :  { %360 = vmatmul.mubr.msk.f32.vlgmr.msra.gmra.mrb[0].mxu0 %vm40_vm1, %v28_v16  ;;  %v472_v44 = vpack.c.bf16 %v216_v43, %v215_v42  ;;  %v218_v46 = vld [vmem:[%s679_s5 + $0x48] sm:$0xff]  ;;  %v219_v48 = vld [vmem:[%s679_s5 + $0x50] sm:$0xff]  ;;  %v220_v49 = vld [vmem:[%s679_s5 + $0x58] sm:$0xff] }
   0xc   :  { %429 = vmatprep.mubr.msk.f32.mxu0 %vm490_vm0, %v491_v4  ;;  %464 = vmatpush3.bf16.msra.mxu0 %v463_v36  ;;  %v475_v47 = vpack.c.bf16 %v218_v46, %v217_v45  ;;  %v478_v50 = vpack.c.bf16 %v220_v49, %v219_v48  ;;  %v221_v51 = vld [vmem:[%s679_s5 + $0x60] sm:$0xff]  ;;  %v222_v52 = vld [vmem:[%s679_s5 + $0x68] sm:$0xff]  ;;  %v223_v59 = vld [vmem:[%s679_s5 + $0x70] sm:$0xff] }
   0xd   :  { %446 = vmatpush3.bf16.msra.mxu1 %v445_v17  ;;  %465 = vmatprep.subr.bf16.mxu0 %v489_v0  ;;  %v481_v53 = vpack.c.bf16 %v222_v52, %v221_v51  ;;  %v308_v54 = vld [vmem:[%s680_s2] ss:$0 sm:$0xff]  ;;  %v224_v60 = vld [vmem:[%s679_s5 + $0x78] sm:$0xff] }
   0xe   :  { %447 = vmatprep.subr.bf16.mxu1 %v489_v0  ;;  %v484_v61 = vpack.c.bf16 %v224_v60, %v223_v59  ;;  %v310_v63 = vld [vmem:[%s682_s4] ss:$0 sm:$0xff] }
   0xf   :  { %v311_v4 = vld [vmem:[#allocation2] ss:$0 sm:$0xff] }
  0x10   :  { %467 = vmatpush3.bf16.msra.mxu0 %v466_v38 }
  0x11   :  { %449 = vmatpush3.bf16.msra.mxu1 %v448_v20  ;;  %468 = vmatprep.subr.bf16.mxu0 %v489_v0 }
  0x12   :  { %450 = vmatprep.subr.bf16.mxu1 %v489_v0 }
  0x14   :  { %470 = vmatpush3.bf16.msra.mxu0 %v469_v41 }
  0x15   :  { %452 = vmatpush3.bf16.msra.mxu1 %v451_v23  ;;  %471 = vmatprep.subr.bf16.mxu0 %v489_v0 }
  0x16   :  { %453 = vmatprep.subr.bf16.mxu1 %v489_v0 }
  0x18   :  { %473 = vmatpush3.bf16.msra.mxu0 %v472_v44 }
  0x19   :  { %455 = vmatpush3.bf16.msra.mxu1 %v454_v26  ;;  %474 = vmatprep.subr.bf16.mxu0 %v489_v0 }
  0x1a   :  { %456 = vmatprep.subr.bf16.mxu1 %v489_v0 }
  0x1c   :  { %476 = vmatpush3.bf16.msra.mxu0 %v475_v47 }
  0x1d   :  { %458 = vmatpush3.bf16.msra.mxu1 %v457_v29  ;;  %477 = vmatprep.subr.bf16.mxu0 %v489_v0 }
  0x1e   :  { %459 = vmatprep.subr.bf16.mxu1 %v489_v0 }
  0x20   :  { %479 = vmatpush3.bf16.msra.mxu0 %v478_v50 }
  0x21   :  { %461 = vmatpush3.bf16.msra.mxu1 %v460_v32  ;;  %480 = vmatprep.subr.bf16.mxu0 %v489_v0 }
  0x24   :  { %482 = vmatpush3.bf16.msra.mxu0 %v481_v53 }
  0x25   :  { %483 = vmatprep.subr.bf16.mxu0 %v489_v0 }
  0x28   :  { %485 = vmatpush3.bf16.msra.mxu0 %v484_v61 }
  0xde   :  { %v110_v55 = vpop.f32.mrb[0].mxu0 }
  0xdf   :  { %v111_v56 = vadd.f32 %v308_v54, %v110_v55  ;;  %v361_v57 = vpop.f32.mrb[1].mxu0 }
  0xe1   :  { %v114_v58 = vmax.f32 %v111_v56, 0.0 }
  0xe3   :  { %395 = vmatmul.mubr.f32.vlgmr.msra.gmra.mrb[0].mxu1 %v114_v58 }
 0x1b6   :  { %v204_v0 = vpop.f32.mrb[0].mxu1 }
 0x1b7   :  { %v205_v1 = vadd.f32 %v310_v63, %v204_v0  ;;  %v396_v2 = vpop.f32.mrb[1].mxu1 }
 0x1b9   :  { %v208_v3 = vmax.f32 %v205_v1, 0.0 }
 0x1bb   :  { %430 = vmatmul.mubr.f32.vlgmr.msra.gmra.mrb[2].mxu0 %v208_v3 }
 0x28e   :  { %v298_v5 = vpop.f32.mrb[2].mxu0 }
 0x28f   :  { %v299_v6 = vadd.f32 %v311_v4, %v298_v5  ;;  %v431_v7 = vpop.f32.mrb[3].mxu0 }
 0x291   :  { %303 = vst.msk [vmem:[%s683_s7] sm:$0xff] %vm302_vm2, %v299_v6 }

</bundles_post_ra>
